<compile_context>
chip_gen: v5e
topology: v5e:2x2
jax: 0.10.0
libtpu: 0.0.40
codegen_flags: <defaults>
</compile_context>

<pallas_src>
import math

import jax
import jax.numpy as jnp
from jax.experimental import pallas as pl
from jax.experimental.pallas import tpu as pltpu

_INV_SQRT2 = 1.0 / math.sqrt(2.0)


def _exact_gelu(x):
    # erf-based GELU, matching torch.nn.GELU() default.
    return 0.5 * x * (1.0 + jax.lax.erf(x * _INV_SQRT2))


def _make_trend_mix_kernel(lens, offs):
    """lens/offs: per-scale lengths and lane offsets inside the packed
    (rows, sum_L) slab, in original trend_list order (finest scale first)."""
    n = len(lens)

    def kernel(*refs):
        # refs layout: x_slab, param_buf[0..n-2] (coarse->fine), out_slab
        x_ref = refs[0]
        p_refs = refs[1:n]
        out_ref = refs[n]

        # PyTorch walks the reversed list: coarsest scale first.
        rev = [n - 1 - k for k in range(n)]

        def load_scale(s):
            return x_ref[:, offs[s]:offs[s] + lens[s]].astype(jnp.float32)

        def store_scale(s, val):
            out_ref[:, offs[s]:offs[s] + lens[s]] = val.astype(out_ref.dtype)

        # out_low starts as the coarsest trend and is emitted unchanged.
        cur = load_scale(rev[0])                        # (rows_tile, L_coarsest)
        store_scale(rev[0], cur)

        # Up-sampling chain: Linear(L_in->L_out) -> GELU -> Linear(L_out->L_out),
        # residual-added onto the next-finer trend.
        for i in range(n - 1):
            l_in, l_out = lens[rev[i]], lens[rev[i + 1]]
            pbuf = p_refs[i]                            # (l_in + l_out + 2, l_out)
            w1 = pbuf[0:l_in, :]
            b1 = pbuf[l_in:l_in + 1, :]
            w2 = pbuf[l_in + 1:l_in + 1 + l_out, :]
            b2 = pbuf[l_in + 1 + l_out:l_in + 2 + l_out, :]

            h = jnp.dot(cur, w1, preferred_element_type=jnp.float32) + b1
            h = _exact_gelu(h)
            res = jnp.dot(h, w2, preferred_element_type=jnp.float32) + b2
            cur = load_scale(rev[i + 1]) + res
            store_scale(rev[i + 1], cur)

    return kernel


def _pick_row_tile(rows):
    """Rows are fully independent; tile them only when the batch is large."""
    if rows <= 1024:
        return rows
    for t in (1024, 512, 256, 128, 64, 32, 16, 8):
        if rows % t == 0:
            return t
    return rows  # fallback: single block


def multi_scale_trend_mixing(trend_list, params):
    """trend_list[i]: [B, C, L_i] (L_i = seq_len // window**i) -> list of [B, L_i, C]."""
    n = len(trend_list)
    B, C, _ = trend_list[0].shape
    rows = B * C
    dtype = trend_list[0].dtype

    lens = [int(t.shape[-1]) for t in trend_list]
    offs = [0]
    for l in lens[:-1]:
        offs.append(offs[-1] + l)
    sum_l = offs[-1] + lens[-1]

    # One lane-dense (rows, sum_L) input slab (row-major reshapes are free views).
    x_slab = jnp.concatenate(
        [t.reshape(rows, l) for t, l in zip(trend_list, lens)], axis=1)

    # One packed [w1; b1; w2; b2] buffer per up-sampling layer (coarse->fine).
    p_bufs = [
        jnp.concatenate(
            [w1, b1.reshape(1, -1), w2, b2.reshape(1, -1)], axis=0
        ).astype(jnp.float32)
        for (w1, b1, w2, b2) in params
    ]

    tile_r = _pick_row_tile(rows)
    if rows % tile_r != 0:
        tile_r = rows
    grid = (rows // tile_r,)

    in_specs = [pl.BlockSpec((tile_r, sum_l), lambda r: (r, 0))]
    for pb in p_bufs:
        # Full-array block, constant index -> stays VMEM-resident across row tiles.
        in_specs.append(pl.BlockSpec(pb.shape, lambda r: (0, 0)))
    out_specs = pl.BlockSpec((tile_r, sum_l), lambda r: (r, 0))

    out_slab = pl.pallas_call(
        _make_trend_mix_kernel(lens, offs),
        out_shape=jax.ShapeDtypeStruct((rows, sum_l), dtype),
        grid=grid,
        in_specs=in_specs,
        out_specs=out_specs,
        compiler_params=pltpu.CompilerParams(
            dimension_semantics=("parallel",),     # row tiles split across TCs (v7x)
            vmem_limit_bytes=48 * 1024 * 1024,     # fits v7x's 64 MiB physical VMEM
        ),
    )(x_slab, *p_bufs)

    # Layout plumbing only (no compute): (rows, L_i) -> [B, L_i, C], handled by XLA.
    outs = []
    for l, off in zip(lens, offs):
        outs.append(jnp.transpose(out_slab[:, off:off + l].reshape(B, C, l), (0, 2, 1)))
    return outs


def init_params(key, seq_len, window, num_layers):
    """PyTorch-Linear-like uniform init, in forward-application order (coarse->fine).

    up_sampling_layers[j] = Linear(seq//w^(L-j) -> seq//w^(L-j-1)), GELU,
                            Linear(seq//w^(L-j-1) -> seq//w^(L-j-1)).
    Weights stored transposed as [L_in, L_out] so the kernel computes x @ W."""
    params = []
    for i in reversed(range(num_layers)):
        l_in = seq_len // window ** (i + 1)
        l_out = seq_len // window ** i
        key, k1, k2, k3, k4 = jax.random.split(key, 5)
        bound1 = 1.0 / math.sqrt(l_in)
        bound2 = 1.0 / math.sqrt(l_out)
        w1 = jax.random.uniform(k1, (l_in, l_out), jnp.float32, -bound1, bound1)
        b1 = jax.random.uniform(k2, (1, l_out), jnp.float32, -bound1, bound1)
        w2 = jax.random.uniform(k3, (l_out, l_out), jnp.float32, -bound2, bound2)
        b2 = jax.random.uniform(k4, (1, l_out), jnp.float32, -bound2, bound2)
        params.append((w1, b1, w2, b2))
    return params


def _reference(trend_list, params):
    """Pure-JAX literal mirror of the PyTorch forward, for verification."""
    rev = list(trend_list)[::-1]
    n = len(rev)
    out_low = rev[0]
    outs = [jnp.transpose(out_low, (0, 2, 1))]
    if n > 1:
        out_high = rev[1]
        for i in range(n - 1):
            w1, b1, w2, b2 = params[i]
            h = out_low @ w1 + b1
            h = 0.5 * h * (1.0 + jax.lax.erf(h * _INV_SQRT2))
            res = h @ w2 + b2
            out_high = out_high + res
            out_low = out_high
            if i + 2 <= n - 1:
                out_high = rev[i + 2]
            outs.append(jnp.transpose(out_low, (0, 2, 1)))
    outs.reverse()
    return outs


if __name__ == "__main__":
    # configs: seq_len=16, down_sampling_window=2, down_sampling_layers=2
    B, C = 2, 4               # batch, d_model
    seq_len, window, layers = 16, 2, 2

    key = jax.random.PRNGKey(0)
    key, *skeys = jax.random.split(key, layers + 2)
    trend_list = [
        jax.random.normal(skeys[i], (B, C, seq_len // window ** i), jnp.float32)
        for i in range(layers + 1)
    ]
    params = init_params(jax.random.PRNGKey(0), seq_len, window, layers)

    outs = multi_scale_trend_mixing(trend_list, params)
    outs = [jax.block_until_ready(o) for o in outs]

    refs = _reference(trend_list, params)
    for o, r in zip(outs, refs):
        assert o.shape == r.shape, (o.shape, r.shape)
        assert jnp.allclose(o, r, atol=1e-5, rtol=1e-5), float(jnp.max(jnp.abs(o - r)))

    print("KERNEL_OK")
</pallas_src>

<mosaic_0001>
module attributes {stable_mosaic.version = 11 : i64} {
  func.func @kernel(%arg0: i32, %arg1: memref<8x28xf32, #tpu.memory_space<vmem>>, %arg2: memref<14x8xf32, #tpu.memory_space<vmem>>, %arg3: memref<26x16xf32, #tpu.memory_space<vmem>>, %arg4: memref<8x28xf32, #tpu.memory_space<vmem>>) attributes {dimension_semantics = [#tpu.dimension_semantics<parallel>], iteration_bounds = array<i64: 1>, scalar_prefetch = 0 : i64, scratch_operands = 0 : i64, tpu.core_type = #tpu.core_type<tc>, window_params = [{transform_indices = @transform_0, window_bounds = array<i64: 8, 28>}, {pipeline_mode = #tpu.pipeline_mode<synchronous>, transform_indices = @transform_1, window_bounds = array<i64: 14, 8>}, {pipeline_mode = #tpu.pipeline_mode<synchronous>, transform_indices = @transform_2, window_bounds = array<i64: 26, 16>}, {transform_indices = @transform_3, window_bounds = array<i64: 8, 28>}]} {
    %c0 = arith.constant 0 : index
    %c24 = arith.constant 24 : index
    %0 = vector.load %arg1[%c0, %c24] : memref<8x28xf32, #tpu.memory_space<vmem>>, vector<8x4xf32>
    %c0_0 = arith.constant 0 : index
    %c24_1 = arith.constant 24 : index
    %1 = vector.load %arg4[%c0_0, %c24_1] : memref<8x28xf32, #tpu.memory_space<vmem>>, vector<8x4xf32>
    tpu.vector_store %arg4[%c0_0, %c24_1], %0 {strides = array<i32>} : memref<8x28xf32, #tpu.memory_space<vmem>>, vector<8x4xf32>,
    %c0_2 = arith.constant 0 : index
    %c0_3 = arith.constant 0 : index
    %2 = vector.load %arg2[%c0_2, %c0_3] : memref<14x8xf32, #tpu.memory_space<vmem>>, vector<4x8xf32>
    %c4 = arith.constant 4 : index
    %c0_4 = arith.constant 0 : index
    %3 = vector.load %arg2[%c4, %c0_4] : memref<14x8xf32, #tpu.memory_space<vmem>>, vector<1x8xf32>
    %c5 = arith.constant 5 : index
    %c0_5 = arith.constant 0 : index
    %4 = vector.load %arg2[%c5, %c0_5] : memref<14x8xf32, #tpu.memory_space<vmem>>, vector<8x8xf32>
    %c13 = arith.constant 13 : index
    %c0_6 = arith.constant 0 : index
    %5 = vector.load %arg2[%c13, %c0_6] : memref<14x8xf32, #tpu.memory_space<vmem>>, vector<1x8xf32>
    %cst = arith.constant dense<0.000000e+00> : vector<8x8xf32>
    %6 = tpu.matmul %0, %2, %cst {dimension_numbers = #tpu.dot_dimension_numbers<[1], [0], [0], [1], [0, 0, 1, 1], [], []>} : vector<8x4xf32>, vector<4x8xf32>, vector<8x8xf32> -> vector<8x8xf32>
    %7 = vector.broadcast %3 : vector<1x8xf32> to vector<8x8xf32>
    %8 = arith.addf %6, %7 : vector<8x8xf32>
    %cst_7 = arith.constant 5.000000e-01 : f32
    %9 = vector.broadcast %cst_7 : f32 to vector<8x8xf32>
    %10 = arith.mulf %9, %8 : vector<8x8xf32>
    %cst_8 = arith.constant 0.707106769 : f32
    %11 = vector.broadcast %cst_8 : f32 to vector<8x8xf32>
    %12 = arith.mulf %8, %11 : vector<8x8xf32>
    %13 = math.erf %12 : vector<8x8xf32>
    %cst_9 = arith.constant 1.000000e+00 : f32
    %14 = vector.broadcast %cst_9 : f32 to vector<8x8xf32>
    %15 = arith.addf %14, %13 : vector<8x8xf32>
    %16 = arith.mulf %10, %15 : vector<8x8xf32>
    %cst_10 = arith.constant dense<0.000000e+00> : vector<8x8xf32>
    %17 = tpu.matmul %16, %4, %cst_10 {dimension_numbers = #tpu.dot_dimension_numbers<[1], [0], [0], [1], [0, 0, 1, 1], [], []>} : vector<8x8xf32>, vector<8x8xf32>, vector<8x8xf32> -> vector<8x8xf32>
    %18 = vector.broadcast %5 : vector<1x8xf32> to vector<8x8xf32>
    %19 = arith.addf %17, %18 : vector<8x8xf32>
    %c0_11 = arith.constant 0 : index
    %c16 = arith.constant 16 : index
    %20 = vector.load %arg1[%c0_11, %c16] : memref<8x28xf32, #tpu.memory_space<vmem>>, vector<8x8xf32>
    %21 = arith.addf %20, %19 : vector<8x8xf32>
    %c0_12 = arith.constant 0 : index
    %c16_13 = arith.constant 16 : index
    %22 = vector.load %arg4[%c0_12, %c16_13] : memref<8x28xf32, #tpu.memory_space<vmem>>, vector<8x8xf32>
    tpu.vector_store %arg4[%c0_12, %c16_13], %21 {strides = array<i32>} : memref<8x28xf32, #tpu.memory_space<vmem>>, vector<8x8xf32>,
    %c0_14 = arith.constant 0 : index
    %c0_15 = arith.constant 0 : index
    %23 = vector.load %arg3[%c0_14, %c0_15] : memref<26x16xf32, #tpu.memory_space<vmem>>, vector<8x16xf32>
    %c8 = arith.constant 8 : index
    %c0_16 = arith.constant 0 : index
    %24 = vector.load %arg3[%c8, %c0_16] : memref<26x16xf32, #tpu.memory_space<vmem>>, vector<1x16xf32>
    %c9 = arith.constant 9 : index
    %c0_17 = arith.constant 0 : index
    %25 = vector.load %arg3[%c9, %c0_17] : memref<26x16xf32, #tpu.memory_space<vmem>>, vector<16x16xf32>
    %c25 = arith.constant 25 : index
    %c0_18 = arith.constant 0 : index
    %26 = vector.load %arg3[%c25, %c0_18] : memref<26x16xf32, #tpu.memory_space<vmem>>, vector<1x16xf32>
    %cst_19 = arith.constant dense<0.000000e+00> : vector<8x16xf32>
    %27 = tpu.matmul %21, %23, %cst_19 {dimension_numbers = #tpu.dot_dimension_numbers<[1], [0], [0], [1], [0, 0, 1, 1], [], []>} : vector<8x8xf32>, vector<8x16xf32>, vector<8x16xf32> -> vector<8x16xf32>
    %28 = vector.broadcast %24 : vector<1x16xf32> to vector<8x16xf32>
    %29 = arith.addf %27, %28 : vector<8x16xf32>
    %cst_20 = arith.constant 5.000000e-01 : f32
    %30 = vector.broadcast %cst_20 : f32 to vector<8x16xf32>
    %31 = arith.mulf %30, %29 : vector<8x16xf32>
    %cst_21 = arith.constant 0.707106769 : f32
    %32 = vector.broadcast %cst_21 : f32 to vector<8x16xf32>
    %33 = arith.mulf %29, %32 : vector<8x16xf32>
    %34 = math.erf %33 : vector<8x16xf32>
    %cst_22 = arith.constant 1.000000e+00 : f32
    %35 = vector.broadcast %cst_22 : f32 to vector<8x16xf32>
    %36 = arith.addf %35, %34 : vector<8x16xf32>
    %37 = arith.mulf %31, %36 : vector<8x16xf32>
    %cst_23 = arith.constant dense<0.000000e+00> : vector<8x16xf32>
    %38 = tpu.matmul %37, %25, %cst_23 {dimension_numbers = #tpu.dot_dimension_numbers<[1], [0], [0], [1], [0, 0, 1, 1], [], []>} : vector<8x16xf32>, vector<16x16xf32>, vector<8x16xf32> -> vector<8x16xf32>
    %39 = vector.broadcast %26 : vector<1x16xf32> to vector<8x16xf32>
    %40 = arith.addf %38, %39 : vector<8x16xf32>
    %c0_24 = arith.constant 0 : index
    %c0_25 = arith.constant 0 : index
    %41 = vector.load %arg1[%c0_24, %c0_25] : memref<8x28xf32, #tpu.memory_space<vmem>>, vector<8x16xf32>
    %42 = arith.addf %41, %40 : vector<8x16xf32>
    %c0_26 = arith.constant 0 : index
    %c0_27 = arith.constant 0 : index
    %43 = vector.load %arg4[%c0_26, %c0_27] : memref<8x28xf32, #tpu.memory_space<vmem>>, vector<8x16xf32>
    tpu.vector_store %arg4[%c0_26, %c0_27], %42 {strides = array<i32>} : memref<8x28xf32, #tpu.memory_space<vmem>>, vector<8x16xf32>,
    return
  }
  func.func @transform_0(%arg0: i32) -> (i32, i32) {
    %c0_i32 = arith.constant 0 : i32
    %c0_i32_0 = arith.constant 0 : i32
    return %arg0, %c0_i32 : i32, i32
  }
  func.func @transform_1(%arg0: i32) -> (i32, i32) {
    %c0_i32 = arith.constant 0 : i32
    %c0_i32_0 = arith.constant 0 : i32
    %c0_i32_1 = arith.constant 0 : i32
    return %c0_i32, %c0_i32_0 : i32, i32
  }
  func.func @transform_2(%arg0: i32) -> (i32, i32) {
    %c0_i32 = arith.constant 0 : i32
    %c0_i32_0 = arith.constant 0 : i32
    %c0_i32_1 = arith.constant 0 : i32
    return %c0_i32, %c0_i32_0 : i32, i32
  }
  func.func @transform_3(%arg0: i32) -> (i32, i32) {
    %c0_i32 = arith.constant 0 : i32
    %c0_i32_0 = arith.constant 0 : i32
    return %arg0, %c0_i32 : i32, i32
  }
}

</mosaic_0001>

<bundles_post_ra>
// kernel: tpu_custom_call.1
= control target key start
LH: loop header
LB: loop body
LE: loop exit
PB: predicated region body
PF: predicated region fallthrough
CT: control target
= control target key end

     0   :  { %vm16_vm0 = vcmask 228544   ;;  %vm29_vm1 = vcmask 1043456   ;;  %s294_s16 = smov 104   ;;  %s359_s0 = inlined_call_operand.vmem [shape: f32[8,28], index: 0, kind: input, shape index: {}]   ;;  %s360_s1 = inlined_call_operand.vmem [shape: f32[14,8], index: 1, kind: input, shape index: {}]   ;;  %s361_s2 = inlined_call_operand.vmem [shape: f32[26,16], index: 2, kind: input, shape index: {}]   ;;  %s362_s3 = inlined_call_operand.hbm [shape: f32[8,28], index: 3, kind: output, shape index: {}]  }
   0x1   :  { %v321_v0 = vld [vmem:[%s359_s0] sm:$0xff] }
   0x2   :  { %v18_v1 = vld [vmem:[%s360_s1] sm:$0xf]  ;;  %24 = vrot.lane.b32.xlu0 %v321_v0, %s294_s16  ;;  %17 = vst.msk [vmem:[#allocation2] sm:$0xff] %vm16_vm0, %v321_v0 }
   0x3   :  { %249 = vmatpush.msk.msra.mxu0 %vm29_vm1, %v18_v1 }
   0x4   :  { %8 = vsyncpa [#allocation3], 0  ;;  %vm26_vm2 = vcmask 31744   ;;  %v260_v3 = vld [vmem:[%s360_s1 + $0x4] ss:$0 sm:$0xff]  ;;  %v20_v15 = vld [vmem:[%s360_s1 + $0x5] sm:$0xff] }
   0x5   :  { %117 = vmatpush.msra.mxu1 %v20_v15  ;;  %vm98_vm7 = vcmask 64512   ;;  %v261_v46 = vld [vmem:[%s360_s1 + $0xd] ss:$0 sm:$0xff]  ;;  %s295_s22 = smov 16   ;;  %v130_v49 = vld [vmem:[%s361_s2] sm:$0xff]  ;;  %vm128_vm8 = vcmask 195712  }
   0x6   :  { %156 = vmatpush.msra.mxu2 %v130_v49  ;;  %s296_s25 = smov 112   ;;  %v262_v53 = vld [vmem:[%s361_s2 + $0x8] ss:$0 sm:$0xff]  ;;  %vm206_vm13 = vcmask 130048   ;;  %s297_s6 = smov [#allocation2]  }
   0x7   :  { %s238_s7 = sshll.u32 %s297_s6, 4  ;;  %s240_s10 = sshll.u32 %s362_s3, 4  ;;  %s239_s7 = int_to_ptr.vmem [resolvable:$true] %s238_s7  ;;  %s241_s10 = int_to_ptr.hbm [resolvable:$true] %s240_s10 }
  0x74   :  { %v25_v2 = vpop.permute.xlu0 %24 }
  0x75   :  { %250 = vmatmul.msk.f32.vlgmr.msra.gmra.mxu0 %vm26_vm2, %v25_v2  ;;  %v133_v2 = vld [vmem:[%s361_s2 + $0x11] sm:$0xff] }
  0x76   :  { %224 = vmatpush.msra.mxu3 %v133_v2 }
  0xf2   :  { %v50_v4 = vpop.f32.mrf.mxu0 }
  0xf3   :  { %v51_v5 = vadd.f32 %v260_v3, %v50_v4  ;;  %v132_v3 = vld [vmem:[%s361_s2 + $0x9] sm:$0xff] }
  0xf4   :  { %225 = vmatpush.msra.mxu3 %v132_v3 }
  0xf5   :  { %v54_v6 = vmul.f32 0.70710677, %v51_v5  ;;  %v53_v43 = vmul.f32 0.5, %v51_v5 }
  0xf7   :  { %v55_v7 = vmul.f32 %v54_v6, %v54_v6 }
  0xf9   :  { %v56_v8 = vmin.f32 %v55_v7, 16.0 }
  0xfb   :  { %v57_v9 = vmul.f32 2.1237322e-06, %v56_v8  ;;  %v68_v10 = vmul.f32 3.8918573e-05, %v56_v8 }
  0xfd   :  { %v58_v11 = vadd.f32 0.00028619796, %v57_v9  ;;  %v69_v12 = vadd.f32 0.001143296, %v68_v10 }
  0xff   :  { %v59_v13 = vmul.f32 %v58_v11, %v56_v8  ;;  %v70_v14 = vmul.f32 %v69_v12, %v56_v8 }
 0x101   :  { %v71_v16 = vadd.f32 0.014752088, %v70_v14  ;;  %v60_v17 = vadd.f32 0.0036580483, %v59_v13 }
 0x103   :  { %v72_v18 = vmul.f32 %v71_v16, %v56_v8  ;;  %v61_v20 = vmul.f32 %v60_v17, %v56_v8 }
 0x105   :  { %v73_v19 = vadd.f32 0.112945676, %v72_v18  ;;  %v62_v23 = vadd.f32 0.05243302, %v61_v20 }
 0x107   :  { %v74_v21 = vmul.f32 %v73_v19, %v56_v8  ;;  %v63_v26 = vmul.f32 %v62_v23, %v56_v8 }
 0x109   :  { %v75_v22 = vadd.f32 0.4994258, %v74_v21  ;;  %v64_v27 = vadd.f32 0.18741608, %v63_v26 }
 0x10b   :  { %v76_v24 = vmul.f32 %v75_v22, %v56_v8  ;;  %v65_v29 = vmul.f32 %v64_v27, %v56_v8 }
 0x10d   :  { %v77_v25 = vadd.f32 1.0, %v76_v24  ;;  %v66_v33 = vadd.f32 1.1283791, %v65_v29 }
 0x10f   :  { %264 = vrcp.f32 %v77_v25  ;;  %v89_v32 = vand.u32 2147483648, %v77_v25  ;;  %v87_v35 = vand.u32 2147483647, %v77_v25  ;;  %vm83_vm4 = vweird.f32 %v77_v25 }
 0x110   :  { %v67_v38 = vmul.f32 %v66_v33, %v54_v6 }
 0x111   :  { %v90_v37 = vor.u32 1.1754944e-38, %v89_v32  ;;  %vm88_vm6 = vcmp.eq.f32.partialorder %v87_v35, 8.507059e+37 }
 0x115   :  { %v265_v28 = vpop.eup %264 }
 0x116   :  { %v79_v30 = vmul.f32 %v265_v28, %v77_v25  ;;  %vm84_vm3 = vweird.f32 %v265_v28 }
 0x117   :  { %vm85_vm5 = vmor %vm83_vm4, %vm84_vm3 }
 0x118   :  { %v80_v31 = vsub.f32 1.0, %v79_v30 }
 0x11a   :  { %v81_v34 = vmul.f32 %v265_v28, %v80_v31 }
 0x11c   :  { %v82_v36 = vadd.f32 %v265_v28, %v81_v34  ;;  %v263_v34 = vld [vmem:[%s361_s2 + $0x19] ss:$0 sm:$0xff] }
 0x11e   :  { %v86_v39 = vsel %vm85_vm5, %v265_v28, %v82_v36 }
 0x11f   :  { %v91_v40 = vsel %vm88_vm6, %v90_v37, %v86_v39 }
 0x120   :  { %v92_v41 = vmul.f32 %v91_v40, %v67_v38 }
 0x122   :  { %v251_v42 = vclamps-f32 %v92_v41, 1.0 }
 0x124   :  { %v95_v44 = vadd.f32 1.0, %v251_v42 }
 0x126   :  { %v96_v45 = vmul.f32 %v95_v44, %v53_v43 }
 0x128   :  { %252 = vmatmul.msk.f32.vlgmr.msra.gmra.mxu1 %vm98_vm7, %v96_v45 }
 0x1a5   :  { %v119_v47 = vpop.f32.mrf.mxu1 }
 0x1a6   :  { %v120_v48 = vadd.f32 %v261_v46, %v119_v47 }
 0x1a8   :  { %124 = vrot.lane.b32.xlu0 %v120_v48, %s295_s22 }
 0x21a   :  { %v125_v50 = vpop.permute.xlu0 %124 }
 0x21b   :  { %v127_v51 = vadd.f32 %v125_v50, %v321_v0 }
 0x21d   :  { %129 = vst.msk [vmem:[#allocation2] sm:$0xff] %vm128_vm8, %v127_v51  ;;  %137 = vrot.lane.b32.xlu1 %v127_v51, %s296_s25 }
 0x28f   :  { %v138_v52 = vpop.permute.xlu1 %137 }
 0x290   :  { %253 = vmatmul.msk.f32.vlgmr.msra.gmra.mxu2 %vm98_vm7, %v138_v52 }
 0x313   :  { %v158_v54 = vpop.f32.mrf.mxu2 }
 0x314   :  { %v159_v55 = vadd.f32 %v262_v53, %v158_v54 }
 0x316   :  { %v162_v56 = vmul.f32 0.70710677, %v159_v55  ;;  %v161_v31 = vmul.f32 0.5, %v159_v55 }
 0x318   :  { %v163_v57 = vmul.f32 %v162_v56, %v162_v56 }
 0x31a   :  { %v164_v58 = vmin.f32 %v163_v57, 16.0 }
 0x31c   :  { %v165_v59 = vmul.f32 2.1237322e-06, %v164_v58  ;;  %v176_v60 = vmul.f32 3.8918573e-05, %v164_v58 }
 0x31e   :  { %v166_v61 = vadd.f32 0.00028619796, %v165_v59  ;;  %v177_v62 = vadd.f32 0.001143296, %v176_v60 }
 0x320   :  { %v167_v63 = vmul.f32 %v166_v61, %v164_v58  ;;  %v178_v1 = vmul.f32 %v177_v62, %v164_v58 }
 0x322   :  { %v179_v4 = vadd.f32 0.014752088, %v178_v1  ;;  %v168_v5 = vadd.f32 0.0036580483, %v167_v63 }
 0x324   :  { %v180_v6 = vmul.f32 %v179_v4, %v164_v58  ;;  %v169_v8 = vmul.f32 %v168_v5, %v164_v58 }
 0x326   :  { %v181_v7 = vadd.f32 0.112945676, %v180_v6  ;;  %v170_v11 = vadd.f32 0.05243302, %v169_v8 }
 0x328   :  { %v182_v9 = vmul.f32 %v181_v7, %v164_v58  ;;  %v171_v14 = vmul.f32 %v170_v11, %v164_v58 }
 0x32a   :  { %v183_v10 = vadd.f32 0.4994258, %v182_v9  ;;  %v172_v15 = vadd.f32 0.18741608, %v171_v14 }
 0x32c   :  { %v184_v12 = vmul.f32 %v183_v10, %v164_v58  ;;  %v173_v17 = vmul.f32 %v172_v15, %v164_v58 }
 0x32e   :  { %v185_v13 = vadd.f32 1.0, %v184_v12  ;;  %v174_v21 = vadd.f32 1.1283791, %v173_v17 }
 0x330   :  { %266 = vrcp.f32 %v185_v13  ;;  %v197_v20 = vand.u32 2147483648, %v185_v13  ;;  %v195_v23 = vand.u32 2147483647, %v185_v13  ;;  %vm191_vm10 = vweird.f32 %v185_v13 }
 0x331   :  { %v175_v26 = vmul.f32 %v174_v21, %v162_v56 }
 0x332   :  { %v198_v25 = vor.u32 1.1754944e-38, %v197_v20  ;;  %vm196_vm12 = vcmp.eq.f32.partialorder %v195_v23, 8.507059e+37 }
 0x336   :  { %v267_v16 = vpop.eup %266 }
 0x337   :  { %v187_v18 = vmul.f32 %v267_v16, %v185_v13  ;;  %vm192_vm9 = vweird.f32 %v267_v16 }
 0x338   :  { %vm193_vm11 = vmor %vm191_vm10, %vm192_vm9 }
 0x339   :  { %v188_v19 = vsub.f32 1.0, %v187_v18 }
 0x33b   :  { %v189_v22 = vmul.f32 %v267_v16, %v188_v19 }
 0x33d   :  { %v190_v24 = vadd.f32 %v267_v16, %v189_v22 }
 0x33f   :  { %v194_v27 = vsel %vm193_vm11, %v267_v16, %v190_v24 }
 0x340   :  { %v199_v28 = vsel %vm196_vm12, %v198_v25, %v194_v27 }
 0x341   :  { %v200_v29 = vmul.f32 %v199_v28, %v175_v26 }
 0x343   :  { %v254_v30 = vclamps-f32 %v200_v29, 1.0 }
 0x345   :  { %v203_v32 = vadd.f32 1.0, %v254_v30 }
 0x347   :  { %v204_v33 = vmul.f32 %v203_v32, %v161_v31 }
 0x349   :  { %255 = vmatmul.msk.f32.vlgmr.msra.gmra.mxu3 %vm206_vm13, %v204_v33 }
 0x3cc   :  { %v227_v35 = vpop.f32.mrf.mxu3 }
 0x3cd   :  { %v228_v36 = vadd.f32 %v263_v34, %v227_v35 }
 0x3cf   :  { %v231_v37 = vadd.f32 %v228_v36, %v321_v0 }
 0x3d1   :  { %232 = vst.msk [vmem:[#allocation2] sm:$0xff] %vm206_vm13, %v231_v37 }
 0x3d2   :  { %243 = dma.vmem_to_hbm [thread:$0]  %s239_s7, 128, %s241_s10, [#allocation3]  }
 0x3d3   :  { %292 = dma.done.wait [#allocation3], 128  }
 0x3d4   :  { %293 = vsyncadd [#allocation3], 4294967168 }
 0x3d5   :  { %248 = vsyncpa [#allocation3], 1 }

</bundles_post_ra>
